<compile_context>
chip_gen: v5e
topology: v5e:2x2
jax: 0.10.0
libtpu: 0.0.40
codegen_flags: <defaults>
</compile_context>

<pallas_src>
import jax
import jax.numpy as jnp
from jax.experimental import pallas as pl
from jax.experimental.pallas import tpu as pltpu


def generate_encoder(in_channels, max_len):
    """Standard sinusoidal positional encoding -> (max_len, in_channels)."""
    pos = jnp.arange(max_len, dtype=jnp.float32)[:, None]          # (L, 1)
    i = jnp.arange(in_channels, dtype=jnp.float32)[None, :]        # (1, C)
    angle_rates = 1.0 / jnp.power(10000.0, (2.0 * jnp.floor(i / 2.0)) / in_channels)
    angles = pos * angle_rates                                      # (L, C)
    even = (jnp.arange(in_channels)[None, :] % 2) == 0
    return jnp.where(even, jnp.sin(angles), jnp.cos(angles))        # (L, C)


def adaptive_2d_pos_kernel(x_ref,
                           w1_ref, b1_ref,       # fused layer-1 (C, 2C), (1, 2C)
                           w2_ref, b2_ref,       # block-diag layer-2 (2C, 2C), (1, 2C)
                           hpe_ref, wpe_ref,     # pre-expanded PEs (C, H*W)
                           out_ref):
    # Math is kept in f32 even for bf16 I/O (v5e has no bf16 VPU/EUP; the bandwidth
    # win from bf16 HBM traffic is independent of the compute dtype).
    x = x_ref[...].astype(jnp.float32)            # (Bt, C, HW), lane-dense
    Bt, C, HW = x.shape

    # AdaptiveAvgPool2d(1): single lane reduction over the flattened spatial axis.
    avg = jnp.sum(x, axis=-1) * (1.0 / float(HW))                   # (Bt, C)

    # Fused scale MLP for BOTH branches (h | w packed along the last axis):
    #   layer 1: one (Bt, C) @ (C, 2C) dot; layer 2: block-diagonal (2C, 2C) keeps
    #   the branches independent while sharing one MXU round-trip and one sigmoid.
    z1 = jnp.maximum(
        jnp.dot(avg, w1_ref[...], preferred_element_type=jnp.float32) + b1_ref[...],
        0.0)                                                        # (Bt, 2C)
    s = jax.nn.sigmoid(
        jnp.dot(z1, w2_ref[...], preferred_element_type=jnp.float32) + b2_ref[...])  # (Bt, 2C)

    # One tiny post-sigmoid lane->sublane relayout; the h/w split is then a clean
    # sublane slice and the epilogue a pure lane-broadcast FMA.
    s = s[:, :, None]                                               # (Bt, 2C, 1)
    h_s = s[:, :C, :]                                               # (Bt, C, 1)
    w_s = s[:, C:, :]                                               # (Bt, C, 1)

    pos = h_s * hpe_ref[...][None] + w_s * wpe_ref[...][None]       # (Bt, C, HW)
    out_ref[...] = (x + pos).astype(out_ref.dtype)


def init_adaptive_2d_encoder(params, in_channels, height, width, max_h=200, max_w=200):
    """One-time 'module init': pack/fuse weights and pre-expand the PE buffers."""
    C = in_channels
    if height > max_h or width > max_w:
        raise ValueError(f"height/width ({height},{width}) exceed max ({max_h},{max_w})")

    h_pe = generate_encoder(C, max_h).T                             # (C, max_h)
    w_pe = generate_encoder(C, max_w).T                             # (C, max_w)
    # Lane-dense flattened layout: pe[c, h*W + w].
    hpe_flat = jnp.repeat(h_pe[:, :height], width, axis=1)          # (C, H*W) — depends on h
    wpe_flat = jnp.tile(w_pe[:, :width], (1, height))               # (C, H*W) — depends on w

    # Conv2d(C, C, 1) weight is (out, in); pack for row-major (Bt, C) @ (C, .) dots.
    w1 = jnp.concatenate([params["w1h"].T, params["w1w"].T], axis=1)          # (C, 2C)
    b1 = jnp.concatenate([params["b1h"], params["b1w"]], axis=0).T            # (1, 2C)
    w2 = jnp.zeros((2 * C, 2 * C), jnp.float32)
    w2 = w2.at[:C, :C].set(params["w2h"].T).at[C:, C:].set(params["w2w"].T)   # block-diagonal
    b2 = jnp.concatenate([params["b2h"], params["b2w"]], axis=0).T            # (1, 2C)

    return {"consts": (w1, b1, w2, b2, hpe_flat, wpe_flat),
            "C": C, "H": height, "W": width}


def _tpu_vmem_capacity_bytes():
    try:
        return int(getattr(pltpu.get_tpu_info(), "vmem_capacity_bytes", 128 << 20))
    except Exception:
        return 128 << 20


def _plan_batch_tiling(B, per_img_bytes):
    """Generation-aware batch-tile / grid / VMEM-budget policy."""
    vmem_cap = _tpu_vmem_capacity_bytes()
    small_vmem = vmem_cap <= (64 << 20)           # v7x-class: 64 MiB per TC, 2 TCs per chip
    budget_cap = (48 << 20) if small_vmem else (96 << 20)
    target_block = (4 << 20) if small_vmem else (8 << 20)

    bt = max(1, min(B, target_block // per_img_bytes))
    # Megacore sharding (v7x) only pays off at MiB-scale per-step blocks; single-TC
    # chips never pay extra per-step overhead for nothing.
    if small_vmem and bt == B and B >= 2 and B * per_img_bytes >= (2 << 20):
        bt = -(-B // 2)
    n_steps = -(-B // bt)                         # cdiv: no divisibility requirement on B
    return bt, n_steps, budget_cap


def adaptive_2d_position_encoder(x, encoder, *, donate_x=False):
    B, C, H, W = x.shape
    assert C == encoder["C"] and H == encoder["H"] and W == encoder["W"], \
        "input dims must match the encoder's init-time dims"
    HW = H * W
    itemsize = jnp.dtype(x.dtype).itemsize
    consts = encoder["consts"]

    x2d = x.reshape(B, C, HW)                     # lane-dense layout; free (bitcast) reshape

    per_img_bytes = C * HW * itemsize
    bt, n_steps, budget_cap = _plan_batch_tiling(B, per_img_bytes)
    block_bytes = bt * per_img_bytes
    const_bytes = sum(a.size * jnp.dtype(a.dtype).itemsize for a in consts)

    # Double-buffered in/out blocks + double-buffered (small, grid-invariant) constants
    # + f32 temporaries + slack; scales with the block instead of a fixed 16 MiB floor.
    vmem_request = int(min(budget_cap,
                           4 * block_bytes + 4 * bt * C * HW * 4
                           + 2 * const_bytes + (4 << 20)))

    def const_spec(a):
        return pl.BlockSpec(a.shape, lambda b, _nd=a.ndim: (0,) * _nd)

    in_specs = [pl.BlockSpec((bt, C, HW), lambda b: (b, 0, 0))]
    in_specs += [const_spec(a) for a in consts]
    out_specs = pl.BlockSpec((bt, C, HW), lambda b: (b, 0, 0))

    cost = pl.CostEstimate(
        flops=int(B * (5 * C * HW + 12 * C * C)),       # pool + MLP + epilogue FMAs
        transcendentals=int(2 * B * C),                 # sigmoid
        bytes_accessed=int(2 * B * C * HW * itemsize + const_bytes),
    )

    out2d = pl.pallas_call(
        adaptive_2d_pos_kernel,
        out_shape=jax.ShapeDtypeStruct((B, C, HW), x.dtype),
        grid_spec=pltpu.PrefetchScalarGridSpec(
            num_scalar_prefetch=0,
            grid=(n_steps,),
            in_specs=in_specs,
            out_specs=out_specs,
        ),
        compiler_params=pltpu.CompilerParams(
            dimension_semantics=("parallel",),
            vmem_limit_bytes=vmem_request,
        ),
        cost_estimate=cost,
        input_output_aliases=({0: 0} if donate_x else {}),
    )(x2d, *consts)

    return out2d.reshape(B, C, H, W)


def reference(x, params, h_pe_full, w_pe_full):
    """Pure-JAX reference mirroring the PyTorch forward (eval mode)."""
    B, C, H, W = x.shape
    avg = jnp.mean(x, axis=(2, 3))                                   # (B, C)

    def scale(a, w1, b1, w2, b2):
        h = jnp.maximum(a @ w1.T + b1[:, 0], 0.0)
        return jax.nn.sigmoid(h @ w2.T + b2[:, 0])                   # (B, C)

    h_s = scale(avg, params["w1h"], params["b1h"], params["w2h"], params["b2h"])
    w_s = scale(avg, params["w1w"], params["b1w"], params["w2w"], params["b2w"])
    h_pos = h_s[:, :, None, None] * h_pe_full[None, :, :H, None]
    w_pos = w_s[:, :, None, None] * w_pe_full[None, :, None, :W]
    return x + h_pos + w_pos


if __name__ == "__main__":
    B, C, H, W = 2, 32, 16, 16
    MAX_H, MAX_W = 200, 200

    key = jax.random.PRNGKey(0)
    kx, k1, k2, k3, k4, k5, k6, k7, k8 = jax.random.split(key, 9)

    x = jax.random.normal(kx, (B, C, H, W), dtype=jnp.float32)

    # Conv2d(C, C, 1) weight == (C, C) matrix, bias == (C,) -> stored as (C, 1).
    params = {
        "w1h": 0.1 * jax.random.normal(k1, (C, C), dtype=jnp.float32),
        "b1h": 0.1 * jax.random.normal(k2, (C, 1), dtype=jnp.float32),
        "w2h": 0.1 * jax.random.normal(k3, (C, C), dtype=jnp.float32),
        "b2h": 0.1 * jax.random.normal(k4, (C, 1), dtype=jnp.float32),
        "w1w": 0.1 * jax.random.normal(k5, (C, C), dtype=jnp.float32),
        "b1w": 0.1 * jax.random.normal(k6, (C, 1), dtype=jnp.float32),
        "w2w": 0.1 * jax.random.normal(k7, (C, C), dtype=jnp.float32),
        "b2w": 0.1 * jax.random.normal(k8, (C, 1), dtype=jnp.float32),
    }

    # One-time "module init": pack weights, pre-expand PE buffers (not per-call).
    encoder = init_adaptive_2d_encoder(params, C, H, W, MAX_H, MAX_W)

    out = adaptive_2d_position_encoder(x, encoder)
    out = jax.block_until_ready(out)

    h_pe_full = generate_encoder(C, MAX_H).T                         # (C, MAX_H)
    w_pe_full = generate_encoder(C, MAX_W).T                         # (C, MAX_W)
    ref = reference(x, params, h_pe_full, w_pe_full)
    assert out.shape == (B, C, H, W) and out.dtype == jnp.float32
    assert jnp.allclose(out, ref, atol=1e-5, rtol=1e-5), "f32 mismatch vs JAX reference"

    # bf16 I/O path (the v6e/v7x bandwidth lever): math stays f32, HBM traffic is bf16;
    # also exercises the donated-input alias path.
    x_bf16 = x.astype(jnp.bfloat16)
    out_bf16 = adaptive_2d_position_encoder(x_bf16, encoder, donate_x=True)
    out_bf16 = jax.block_until_ready(out_bf16)
    assert out_bf16.shape == (B, C, H, W) and out_bf16.dtype == jnp.bfloat16
    assert jnp.allclose(out_bf16.astype(jnp.float32), ref, atol=1e-1), "bf16 mismatch"

    print("KERNEL_OK")
</pallas_src>

<mosaic_0001>
module attributes {stable_mosaic.version = 11 : i64} {
  func.func @adaptive_2d_pos_kernel(%arg0: i32, %arg1: memref<2x32x256xf32, #tpu.memory_space<vmem>>, %arg2: memref<32x64xf32, #tpu.memory_space<vmem>>, %arg3: memref<1x64xf32, #tpu.memory_space<vmem>>, %arg4: memref<64x64xf32, #tpu.memory_space<vmem>>, %arg5: memref<1x64xf32, #tpu.memory_space<vmem>>, %arg6: memref<32x256xf32, #tpu.memory_space<vmem>>, %arg7: memref<32x256xf32, #tpu.memory_space<vmem>>, %arg8: memref<2x32x256xf32, #tpu.memory_space<vmem>>) attributes {dimension_semantics = [#tpu.dimension_semantics<parallel>], iteration_bounds = array<i64: 1>, scalar_prefetch = 0 : i64, scratch_operands = 0 : i64, tpu.core_type = #tpu.core_type<tc>, window_params = [{transform_indices = @transform_0, window_bounds = array<i64: 2, 32, 256>}, {pipeline_mode = #tpu.pipeline_mode<synchronous>, transform_indices = @transform_1, window_bounds = array<i64: 32, 64>}, {pipeline_mode = #tpu.pipeline_mode<synchronous>, transform_indices = @transform_2, window_bounds = array<i64: 1, 64>}, {pipeline_mode = #tpu.pipeline_mode<synchronous>, transform_indices = @transform_3, window_bounds = array<i64: 64, 64>}, {pipeline_mode = #tpu.pipeline_mode<synchronous>, transform_indices = @transform_4, window_bounds = array<i64: 1, 64>}, {pipeline_mode = #tpu.pipeline_mode<synchronous>, transform_indices = @transform_5, window_bounds = array<i64: 32, 256>}, {pipeline_mode = #tpu.pipeline_mode<synchronous>, transform_indices = @transform_6, window_bounds = array<i64: 32, 256>}, {transform_indices = @transform_7, window_bounds = array<i64: 2, 32, 256>}]} {
    %c0 = arith.constant 0 : index
    %c0_0 = arith.constant 0 : index
    %c0_1 = arith.constant 0 : index
    %0 = vector.load %arg1[%c0, %c0_0, %c0_1] : memref<2x32x256xf32, #tpu.memory_space<vmem>>, vector<2x32x256xf32>
    %cst = arith.constant dense<0.000000e+00> : vector<2x32xf32>
    %1 = vector.multi_reduction <add>, %0, %cst [2] : vector<2x32x256xf32> to vector<2x32xf32>
    %cst_2 = arith.constant 3.906250e-03 : f32
    %2 = vector.broadcast %cst_2 : f32 to vector<2x32xf32>
    %3 = arith.mulf %1, %2 : vector<2x32xf32>
    %c0_3 = arith.constant 0 : index
    %c0_4 = arith.constant 0 : index
    %4 = vector.load %arg2[%c0_3, %c0_4] : memref<32x64xf32, #tpu.memory_space<vmem>>, vector<32x64xf32>
    %cst_5 = arith.constant dense<0.000000e+00> : vector<2x64xf32>
    %5 = tpu.matmul %3, %4, %cst_5 {dimension_numbers = #tpu.dot_dimension_numbers<[1], [0], [0], [1], [0, 0, 1, 1], [], []>} : vector<2x32xf32>, vector<32x64xf32>, vector<2x64xf32> -> vector<2x64xf32>
    %c0_6 = arith.constant 0 : index
    %c0_7 = arith.constant 0 : index
    %6 = vector.load %arg3[%c0_6, %c0_7] : memref<1x64xf32, #tpu.memory_space<vmem>>, vector<1x64xf32>
    %7 = vector.broadcast %6 : vector<1x64xf32> to vector<2x64xf32>
    %8 = arith.addf %5, %7 : vector<2x64xf32>
    %cst_8 = arith.constant 0.000000e+00 : f32
    %9 = vector.broadcast %cst_8 : f32 to vector<2x64xf32>
    %10 = arith.maximumf %8, %9 : vector<2x64xf32>
    %c0_9 = arith.constant 0 : index
    %c0_10 = arith.constant 0 : index
    %11 = vector.load %arg4[%c0_9, %c0_10] : memref<64x64xf32, #tpu.memory_space<vmem>>, vector<64x64xf32>
    %cst_11 = arith.constant dense<0.000000e+00> : vector<2x64xf32>
    %12 = tpu.matmul %10, %11, %cst_11 {dimension_numbers = #tpu.dot_dimension_numbers<[1], [0], [0], [1], [0, 0, 1, 1], [], []>} : vector<2x64xf32>, vector<64x64xf32>, vector<2x64xf32> -> vector<2x64xf32>
    %c0_12 = arith.constant 0 : index
    %c0_13 = arith.constant 0 : index
    %13 = vector.load %arg5[%c0_12, %c0_13] : memref<1x64xf32, #tpu.memory_space<vmem>>, vector<1x64xf32>
    %14 = vector.broadcast %13 : vector<1x64xf32> to vector<2x64xf32>
    %15 = arith.addf %12, %14 : vector<2x64xf32>
    %16 = arith.negf %15 : vector<2x64xf32>
    %17 = math.exp %16 : vector<2x64xf32>
    %cst_14 = arith.constant 1.000000e+00 : f32
    %18 = vector.broadcast %cst_14 : f32 to vector<2x64xf32>
    %19 = arith.addf %18, %17 : vector<2x64xf32>
    %20 = arith.divf %18, %19 : vector<2x64xf32>
    %21 = vector.shape_cast %20 : vector<2x64xf32> to vector<2x64x1xf32>
    %22 = vector.extract_strided_slice %21 {offsets = [0, 0, 0], sizes = [2, 32, 1], strides = [1, 1, 1]} : vector<2x64x1xf32> to vector<2x32x1xf32>
    %23 = vector.extract_strided_slice %21 {offsets = [0, 32, 0], sizes = [2, 32, 1], strides = [1, 1, 1]} : vector<2x64x1xf32> to vector<2x32x1xf32>
    %c0_15 = arith.constant 0 : index
    %c0_16 = arith.constant 0 : index
    %24 = vector.load %arg6[%c0_15, %c0_16] : memref<32x256xf32, #tpu.memory_space<vmem>>, vector<32x256xf32>
    %25 = vector.shape_cast %24 : vector<32x256xf32> to vector<1x32x256xf32>
    %26 = vector.broadcast %22 : vector<2x32x1xf32> to vector<2x32x256xf32>
    %27 = vector.broadcast %25 : vector<1x32x256xf32> to vector<2x32x256xf32>
    %28 = arith.mulf %26, %27 : vector<2x32x256xf32>
    %c0_17 = arith.constant 0 : index
    %c0_18 = arith.constant 0 : index
    %29 = vector.load %arg7[%c0_17, %c0_18] : memref<32x256xf32, #tpu.memory_space<vmem>>, vector<32x256xf32>
    %30 = vector.shape_cast %29 : vector<32x256xf32> to vector<1x32x256xf32>
    %31 = vector.broadcast %23 : vector<2x32x1xf32> to vector<2x32x256xf32>
    %32 = vector.broadcast %30 : vector<1x32x256xf32> to vector<2x32x256xf32>
    %33 = arith.mulf %31, %32 : vector<2x32x256xf32>
    %34 = arith.addf %28, %33 : vector<2x32x256xf32>
    %35 = arith.addf %0, %34 : vector<2x32x256xf32>
    %c0_19 = arith.constant 0 : index
    %c0_20 = arith.constant 0 : index
    %c0_21 = arith.constant 0 : index
    %36 = vector.load %arg8[%c0_19, %c0_20, %c0_21] : memref<2x32x256xf32, #tpu.memory_space<vmem>>, vector<2x32x256xf32>
    tpu.vector_store %arg8[%c0_19, %c0_20, %c0_21], %35 {strides = array<i32>} : memref<2x32x256xf32, #tpu.memory_space<vmem>>, vector<2x32x256xf32>,
    return
  }
  func.func @transform_0(%arg0: i32) -> (i32, i32, i32) {
    %c0_i32 = arith.constant 0 : i32
    %c0_i32_0 = arith.constant 0 : i32
    %c0_i32_1 = arith.constant 0 : i32
    return %arg0, %c0_i32, %c0_i32_0 : i32, i32, i32
  }
  func.func @transform_1(%arg0: i32) -> (i32, i32) {
    %c0_i32 = arith.constant 0 : i32
    %c0_i32_0 = arith.constant 0 : i32
    %c0_i32_1 = arith.constant 0 : i32
    return %c0_i32, %c0_i32_0 : i32, i32
  }
  func.func @transform_2(%arg0: i32) -> (i32, i32) {
    %c0_i32 = arith.constant 0 : i32
    %c0_i32_0 = arith.constant 0 : i32
    %c0_i32_1 = arith.constant 0 : i32
    return %c0_i32, %c0_i32_0 : i32, i32
  }
  func.func @transform_3(%arg0: i32) -> (i32, i32) {
    %c0_i32 = arith.constant 0 : i32
    %c0_i32_0 = arith.constant 0 : i32
    %c0_i32_1 = arith.constant 0 : i32
    return %c0_i32, %c0_i32_0 : i32, i32
  }
  func.func @transform_4(%arg0: i32) -> (i32, i32) {
    %c0_i32 = arith.constant 0 : i32
    %c0_i32_0 = arith.constant 0 : i32
    %c0_i32_1 = arith.constant 0 : i32
    return %c0_i32, %c0_i32_0 : i32, i32
  }
  func.func @transform_5(%arg0: i32) -> (i32, i32) {
    %c0_i32 = arith.constant 0 : i32
    %c0_i32_0 = arith.constant 0 : i32
    %c0_i32_1 = arith.constant 0 : i32
    return %c0_i32, %c0_i32_0 : i32, i32
  }
  func.func @transform_6(%arg0: i32) -> (i32, i32) {
    %c0_i32 = arith.constant 0 : i32
    %c0_i32_0 = arith.constant 0 : i32
    %c0_i32_1 = arith.constant 0 : i32
    return %c0_i32, %c0_i32_0 : i32, i32
  }
  func.func @transform_7(%arg0: i32) -> (i32, i32, i32) {
    %c0_i32 = arith.constant 0 : i32
    %c0_i32_0 = arith.constant 0 : i32
    %c0_i32_1 = arith.constant 0 : i32
    return %arg0, %c0_i32, %c0_i32_0 : i32, i32, i32
  }
}

</mosaic_0001>

<bundles_post_ra>
// kernel: tpu_custom_call.1
= control target key start
LH: loop header
LB: loop body
LE: loop exit
PB: predicated region body
PF: predicated region fallthrough
CT: control target
= control target key end

     0   :  { %12 = vsyncpa [#allocation3], 0  ;;  %s852_s0 = inlined_call_operand.hbm [shape: f32[2,32,256], index: 0, kind: input, shape index: {}]   ;;  %s853_s1 = inlined_call_operand.hbm [shape: f32[32,64], index: 1, kind: input, shape index: {}]   ;;  %s854_s2 = inlined_call_operand.vmem [shape: f32[1,64], index: 2, kind: input, shape index: {}]   ;;  %s855_s3 = inlined_call_operand.hbm [shape: f32[64,64], index: 3, kind: input, shape index: {}]   ;;  %s856_s4 = inlined_call_operand.vmem [shape: f32[1,64], index: 4, kind: input, shape index: {}]   ;;  %s857_s5 = inlined_call_operand.hbm [shape: f32[32,256], index: 5, kind: input, shape index: {}]   ;;  %s858_s6 = inlined_call_operand.hbm [shape: f32[32,256], index: 6, kind: input, shape index: {}]   ;;  %s859_s7 = inlined_call_operand.hbm [shape: f32[2,32,256], index: 7, kind: output, shape index: {}]  }
   0x1   :  { %13 = vsyncpa [#allocation6], 0 }
   0x2   :  { %14 = vsyncpa [#allocation9], 0  ;;  %s33_s26 = sshll.u32 %s853_s1, 4  ;;  %s34_s26 = int_to_ptr.hbm [resolvable:$true] %s33_s26 }
   0x3   :  { %15 = vsyncpa [#allocation4], 0  ;;  %s675_s27 = smov [#allocation5]   ;;  %s676_s29 = smov 128  }
   0x4   :  { %s35_s28 = sshll.u32 %s675_s27, 4  ;;  %s677_s30 = smov 8   ;;  %s36_s28 = int_to_ptr.vmem [resolvable:$true] %s35_s28 }
   0x5   :  { %41 = dma.hbm_to_vmem [thread:$0]  %s34_s26, 512, %s36_s28, [#allocation6], %s676_s29, %s676_s29, %s677_s30  }
   0x6   :  { %s63_s10 = sshll.u32 %s857_s5, 4  ;;  %s678_s11 = smov [#allocation8]   ;;  %s64_s10 = int_to_ptr.hbm [resolvable:$true] %s63_s10 }
   0x7   :  { %s65_s12 = sshll.u32 %s678_s11, 4  ;;  %s20_s15 = sshll.u32 %s852_s0, 4  ;;  %s66_s12 = int_to_ptr.vmem [resolvable:$true] %s65_s12  ;;  %s21_s15 = int_to_ptr.hbm [resolvable:$true] %s20_s15 }
   0x8   :  { %s679_s1 = smov 256   ;;  %s680_s16 = smov 16  }
   0x9   :  { %71 = dma.hbm_to_vmem [thread:$0]  %s64_s10, 1024, %s66_s12, [#allocation9], %s679_s1, %s679_s1, %s680_s16  }
   0xa   :  { %s48_s19 = sshll.u32 %s855_s3, 4  ;;  %s681_s5 = smov [#allocation2]   ;;  %s49_s19 = int_to_ptr.hbm [resolvable:$true] %s48_s19 }
   0xb   :  { %s22_s20 = sshll.u32 %s681_s5, 4  ;;  %s682_s0 = smov [#allocation7]   ;;  %s23_s20 = int_to_ptr.vmem [resolvable:$true] %s22_s20 }
   0xc   :  { %28 = dma.hbm_to_vmem [thread:$0]  %s21_s15, 2048, %s23_s20, [#allocation3], %s679_s1, %s679_s1, %s680_s16  }
   0xd   :  { %s50_s21 = sshll.u32 %s682_s0, 4  ;;  %s76_s24 = sshll.u32 %s858_s6, 4  ;;  %s51_s21 = int_to_ptr.vmem [resolvable:$true] %s50_s21  ;;  %s77_s24 = int_to_ptr.hbm [resolvable:$true] %s76_s24 }
   0xe   :  { %56 = dma.hbm_to_vmem [thread:$0]  %s49_s19, 1024, %s51_s21, [#allocation6], %s676_s29, %s676_s29, %s677_s30  }
   0xf   :  { %s683_s25 = smov [#allocation10]  }
  0x10   :  { %s78_s26 = sshll.u32 %s683_s25, 4  ;;  %s79_s26 = int_to_ptr.vmem [resolvable:$true] %s78_s26 }
  0x11   :  { %84 = dma.hbm_to_vmem [thread:$0]  %s77_s24, 1024, %s79_s26, [#allocation9], %s679_s1, %s679_s1, %s680_s16  }
  0x12   :  { %667 = dma.done.wait [#allocation3], 2048  }
  0x13   :  { %668 = vsyncadd [#allocation3], 4294965248 }
  0x14   :  { %669 = dma.done.wait [#allocation6], 1536  }
  0x15   :  { %670 = vsyncadd [#allocation6], 4294965760 }
  0x16   :  { %671 = dma.done.wait [#allocation9], 2048  }
  0x17   :  { %672 = vsyncadd [#allocation9], 4294965248  ;;  %v169_v0 = vlaneseq  ;;  %v752_v2 = vld [vmem:[#allocation2 + $0x40] sm:$0xff]  ;;  %v754_v3 = vld [vmem:[#allocation2 + $0x48] sm:$0xff]  ;;  %vm174_vm0 = vcmask 130112   ;;  %vm178_vm1 = vcmask 195712  }
  0x18   :  { %v756_v4 = vld [vmem:[#allocation2] sm:$0xff]  ;;  %v133_v5 = vadd.f32 %v754_v3, %v752_v2  ;;  %v760_v6 = vld [vmem:[#allocation2 + $0x8] sm:$0xff]  ;;  %v770_v11 = vld [vmem:[#allocation2 + $0x50] sm:$0xff]  ;;  %vm182_vm2 = vcmask 261312   ;;  %vm191_vm3 = vcmask 1041409   ;;  %vm193_vm4 = vcmask 261120  }
  0x19   :  { %v749_v1 = vshrl.u32 %v169_v0, 7  ;;  %v762_v7 = vld [vmem:[#allocation2 + $0x20] sm:$0xff]  ;;  %v764_v8 = vld [vmem:[#allocation2 + $0x28] sm:$0xff]  ;;  %v121_v9 = vadd.f32 %v760_v6, %v756_v4  ;;  %v772_v12 = vld [vmem:[#allocation2 + $0x58] sm:$0xff]  ;;  %v170_v38 = vand.u32 127, %v169_v0  ;;  %vm229_vm5 = vcmask 523264  }
  0x1a   :  { %v127_v10 = vadd.f32 %v764_v8, %v762_v7  ;;  %134 = vadd.xlane.f32.xlu1 %v133_v5  ;;  %v774_v13 = vld [vmem:[#allocation2 + $0x10] sm:$0xff]  ;;  %v776_v14 = vld [vmem:[#allocation2 + $0x18] sm:$0xff]  ;;  %v778_v15 = vld [vmem:[#allocation2 + $0x60] sm:$0xff]  ;;  %v136_v17 = vadd.f32 %v772_v12, %v770_v11  ;;  %s472_s8 = sshll.u32 %s859_s7, 4  ;;  %s473_s8 = int_to_ptr.hbm [resolvable:$true] %s472_s8 }
  0x1b   :  { %500 = vset.pattern.permute.xlu2 %v749_v1  ;;  %122 = vadd.xlane.f32.xlu0 %v121_v9  ;;  %v780_v16 = vld [vmem:[#allocation2 + $0x68] sm:$0xff]  ;;  %v124_v18 = vadd.f32 %v776_v14, %v774_v13  ;;  %v788_v20 = vld [vmem:[#allocation2 + $0x70] sm:$0xff]  ;;  %v790_v21 = vld [vmem:[#allocation2 + $0x78] sm:$0xff]  ;;  %v172_v40 = vadd.s32 4294967288, %v170_v38  ;;  %v176_v49 = vadd.s32 4294967280, %v170_v38  ;;  %v180_v53 = vadd.s32 4294967272, %v170_v38 }
  0x1c   :  { %128 = vadd.xlane.f32.xlu2 %v127_v10  ;;  %v139_v19 = vadd.f32 %v780_v16, %v778_v15  ;;  %v792_v22 = vld [vmem:[#allocation2 + $0x30] sm:$0xff]  ;;  %v794_v23 = vld [vmem:[#allocation2 + $0x38] sm:$0xff]  ;;  %v142_v24 = vadd.f32 %v790_v21, %v788_v20  ;;  %v154_v28 = vld [vmem:[#allocation5 + $0x8] sm:$0xff] }
  0x1d   :  { %v130_v25 = vadd.f32 %v794_v23, %v792_v22  ;;  %v156_v26 = vld [vmem:[#allocation5 + $0x18] sm:$0xff]  ;;  %v155_v27 = vld [vmem:[#allocation5 + $0x10] sm:$0xff]  ;;  %v153_v29 = vld [vmem:[#allocation5] sm:$0xff] }
  0x1e   :  { %208 = vmatpush.msra.mxu0 %v156_v26  ;;  %v224_v30 = vld [vmem:[#allocation7 + $0x38] sm:$0xff]  ;;  %v223_v31 = vld [vmem:[#allocation7 + $0x30] sm:$0xff]  ;;  %v222_v32 = vld [vmem:[#allocation7 + $0x28] sm:$0xff] }
  0x1f   :  { %241 = vmatpush.msra.mxu1 %v224_v30  ;;  %v221_v33 = vld [vmem:[#allocation7 + $0x20] sm:$0xff]  ;;  %v220_v34 = vld [vmem:[#allocation7 + $0x18] sm:$0xff]  ;;  %v287_v30 = vadd.s32 16, %v749_v1 }
  0x20   :  { %209 = vmatpush.msra.mxu0 %v155_v27  ;;  %v517_v26 = vld [vmem:[%s854_s2] ss:$0 sm:$0xff]  ;;  %s684_s2 = smov [#allocation11]  }
  0x21   :  { %242 = vmatpush.msra.mxu1 %v223_v31  ;;  %v281_v31 = vadd.s32 8, %v749_v1  ;;  %502 = vset.pattern.permute.xlu1 %v287_v30 }
  0x22   :  { %137 = vadd.xlane.f32.xlu1 %v136_v17  ;;  %210 = vmatpush.msra.mxu0 %v154_v28 }
  0x23   :  { %125 = vadd.xlane.f32.xlu0 %v124_v18  ;;  %243 = vmatpush.msra.mxu1 %v222_v32  ;;  %v518_v32 = vld [vmem:[%s856_s4] ss:$0 sm:$0xff]  ;;  %s470_s4 = sshll.u32 %s684_s2, 4  ;;  %s471_s4 = int_to_ptr.vmem [resolvable:$true] %s470_s4 }
  0x24   :  { %140 = vadd.xlane.f32.xlu2 %v139_v19  ;;  %211 = vmatpush.msra.mxu0 %v153_v29  ;;  %v219_v19 = vld [vmem:[#allocation7 + $0x10] sm:$0xff] }
  0x25   :  { %244 = vmatpush.msra.mxu1 %v221_v33  ;;  %501 = vset.pattern.permute.xlu0 %v281_v31 }
  0x27   :  { %245 = vmatpush.msra.mxu1 %v220_v34 }
  0x29   :  { %246 = vmatpush.msra.mxu1 %v219_v19 }
  0x2a   :  { %143 = vadd.xlane.f32.xlu1 %v142_v24  ;;  %v218_v24 = vld [vmem:[#allocation7 + $0x8] sm:$0xff] }
  0x2b   :  { %131 = vadd.xlane.f32.xlu0 %v130_v25  ;;  %247 = vmatpush.msra.mxu1 %v218_v24  ;;  %v217_v25 = vld [vmem:[#allocation7] sm:$0xff] }
  0x2d   :  { %248 = vmatpush.msra.mxu1 %v217_v25 }
  0x8d   :  { %v135_v35 = vpop.xlane.xlu1 %134 }
  0x8e   :  { %v123_v36 = vpop.xlane.xlu0 %122  ;;  %v149_v45 = vmul.f32 0.00390625, %v135_v35 }
  0x8f   :  { %v129_v37 = vpop.xlane.xlu2 %128  ;;  %v145_v46 = vmul.f32 0.00390625, %v123_v36 }
  0x90   :  { %v184_v51 = vperm.slane %v149_v45, %v170_v38  ;;  %v147_v52 = vmul.f32 0.00390625, %v129_v37 }
  0x91   :  { %v171_v54 = vperm.slane %v145_v46, %v170_v38 }
  0x92   :  { %v177_v62 = vperm.slane %v147_v52, %v176_v49  ;;  %v317_v52 = vadd.s32 56, %v749_v1 }
  0x95   :  { %v138_v39 = vpop.xlane.xlu1 %137 }
  0x96   :  { %v150_v41 = vmul.f32 0.00390625, %v138_v39  ;;  %v126_v42 = vpop.xlane.xlu0 %125 }
  0x97   :  { %v141_v43 = vpop.xlane.xlu2 %140  ;;  %v146_v44 = vmul.f32 0.00390625, %v126_v42 }
  0x98   :  { %v151_v47 = vmul.f32 0.00390625, %v141_v43  ;;  %v185_v48 = vperm.slane %v150_v41, %v172_v40 }
  0x99   :  { %v173_v50 = vperm.slane %v146_v44, %v172_v40 }
  0x9a   :  { %v187_v55 = vperm.slane %v151_v47, %v176_v49  ;;  %v186_v57 = vsel %vm174_vm0, %v185_v48, %v184_v51  ;;  %v305_v49 = vadd.s32 40, %v749_v1 }
  0x9b   :  { %v175_v60 = vsel %vm174_vm0, %v173_v50, %v171_v54  ;;  %v293_v50 = vadd.s32 24, %v749_v1  ;;  %v311_v54 = vadd.s32 48, %v749_v1 }
  0x9c   :  { %v188_v5 = vsel %vm178_vm1, %v187_v55, %v186_v57  ;;  %v179_v9 = vsel %vm178_vm1, %v177_v62, %v175_v60  ;;  %v814_v57 = vld [vmem:[#allocation8] sm:$0xff] }
  0x9d   :  { %v144_v56 = vpop.xlane.xlu1 %143 }
  0x9e   :  { %v152_v58 = vmul.f32 0.00390625, %v144_v56  ;;  %v132_v59 = vpop.xlane.xlu0 %131 }
  0x9f   :  { %v148_v61 = vmul.f32 0.00390625, %v132_v59  ;;  %v820_v59 = vld [vmem:[#allocation10 + $0x8] sm:$0xff] }
  0xa0   :  { %v189_v63 = vperm.slane %v152_v58, %v180_v53  ;;  %v818_v58 = vld [vmem:[#allocation10] sm:$0xff] }
  0xa1   :  { %v181_v0 = vperm.slane %v148_v61, %v180_v53  ;;  %v299_v53 = vadd.s32 32, %v749_v1 }
  0xa2   :  { %v190_v10 = vsel %vm182_vm2, %v189_v63, %v188_v5 }
  0xa3   :  { %v183_v17 = vsel %vm182_vm2, %v181_v0, %v179_v9 }
  0xa4   :  { %v192_v18 = vsel %vm191_vm3, %v190_v10, %v183_v17  ;;  %v372_v17 = vld [vmem:[#allocation8 + $0x10] sm:$0xff] }
  0xa5   :  { %487 = vmatmul.msk.f32.vlgmr.msra.gmra.mxu0 %vm193_vm4, %v192_v18  ;;  %v373_v18 = vld [vmem:[#allocation8 + $0x18] sm:$0xff] }
 0x122   :  { %v213_v27 = vpop.f32.mrf.mxu0 }
 0x123   :  { %v214_v28 = vadd.f32 %v517_v26, %v213_v27  ;;  %v396_v26 = vld [vmem:[#allocation10 + $0x10] sm:$0xff]  ;;  %v397_v27 = vld [vmem:[#allocation10 + $0x18] sm:$0xff] }
 0x125   :  { %v216_v29 = vmax.f32 %v214_v28, 0.0 }
 0x127   :  { %488 = vmatmul.msk.f32.vlgmr.msra.gmra.mxu1 %vm229_vm5, %v216_v29 }
 0x1a4   :  { %v250_v33 = vpop.f32.mrf.mxu1 }
 0x1a5   :  { %v251_v34 = vadd.f32 %v518_v32, %v250_v33 }
 0x1a7   :  { %v489_v35 = vmul.f32 -1.442695, %v251_v34 }
 0x1a9   :  { %519 = vpow2.f32 %v489_v35 }
 0x1af   :  { %v520_v36 = vpop.eup %519 }
 0x1b0   :  { %v256_v37 = vadd.f32 1.0, %v520_v36 }
 0x1b2   :  { %521 = vrcp.f32 %v256_v37  ;;  %v268_v41 = vand.u32 2147483648, %v256_v37  ;;  %v266_v43 = vand.u32 2147483647, %v256_v37  ;;  %vm262_vm7 = vweird.f32 %v256_v37 }
 0x1b4   :  { %v269_v45 = vor.u32 1.1754944e-38, %v268_v41  ;;  %vm267_vm9 = vcmp.eq.f32.partialorder %v266_v43, 8.507059e+37 }
 0x1b8   :  { %v522_v38 = vpop.eup %521 }
 0x1b9   :  { %v258_v39 = vmul.f32 %v522_v38, %v256_v37  ;;  %vm263_vm6 = vweird.f32 %v522_v38  ;;  %v374_v37 = vld [vmem:[#allocation8 + $0x20] sm:$0xff] }
 0x1ba   :  { %vm264_vm8 = vmor %vm262_vm7, %vm263_vm6 }
 0x1bb   :  { %v259_v40 = vsub.f32 1.0, %v258_v39 }
 0x1bd   :  { %v260_v42 = vmul.f32 %v522_v38, %v259_v40 }
 0x1bf   :  { %v261_v44 = vadd.f32 %v522_v38, %v260_v42 }
 0x1c1   :  { %v265_v46 = vsel %vm264_vm8, %v522_v38, %v261_v44  ;;  %v375_v38 = vld [vmem:[#allocation8 + $0x28] sm:$0xff] }
 0x1c2   :  { %v270_v47 = vsel %vm267_vm9, %v269_v45, %v265_v46  ;;  %v376_v46 = vld [vmem:[#allocation8 + $0x30] sm:$0xff] }
 0x1c3   :  { %v272_v48 = vperm.slane %v270_v47, 0  ;;  %v321_v51 = vperm.slane %v270_v47, 1  ;;  %v377_v47 = vld [vmem:[#allocation8 + $0x38] sm:$0xff] }
 0x1c5   :  { %289 = vperm.xlu1 %502, %v272_v48   ;;  %283 = vperm.xlu0 %501, %v272_v48  }
 0x1c6   :  { %277 = vperm.xlu2 %500, %v272_v48  }
 0x1cd   :  { %505 = vset.pattern.permute.xlu1 %v305_v49  ;;  %508 = vset.pattern.permute.xlu0 %v749_v1  ;;  %v816_v1 = vld [vmem:[#allocation8 + $0x8] sm:$0xff] }
 0x1ce   :  { %503 = vset.pattern.permute.xlu2 %v293_v50 }
 0x1d5   :  { %307 = vperm.xlu1 %505, %v272_v48   ;;  %326 = vperm.xlu0 %508, %v321_v51  }
 0x1d6   :  { %295 = vperm.xlu2 %503, %v272_v48  }
 0x1dd   :  { %507 = vset.pattern.permute.xlu1 %v317_v52  ;;  %513 = vset.pattern.permute.xlu0 %v305_v49  ;;  %v401_v49 = vld [vmem:[#allocation10 + $0x38] sm:$0xff] }
 0x1de   :  { %504 = vset.pattern.permute.xlu2 %v299_v53 }
 0x1e5   :  { %319 = vperm.xlu1 %507, %v272_v48   ;;  %356 = vperm.xlu0 %513, %v321_v51  }
 0x1e6   :  { %301 = vperm.xlu2 %504, %v272_v48  }
 0x1ed   :  { %510 = vset.pattern.permute.xlu1 %v287_v30  ;;  %516 = vset.pattern.permute.xlu0 %v317_v52 }
 0x1ee   :  { %506 = vset.pattern.permute.xlu2 %v311_v54 }
 0x1f5   :  { %338 = vperm.xlu1 %510, %v321_v51  }
 0x1f6   :  { %313 = vperm.xlu2 %506, %v272_v48  }
 0x1fd   :  { %512 = vset.pattern.permute.xlu1 %v299_v53 }
 0x1fe   :  { %509 = vset.pattern.permute.xlu2 %v281_v31 }
 0x205   :  { %350 = vperm.xlu1 %512, %v321_v51  }
 0x206   :  { %332 = vperm.xlu2 %509, %v321_v51  }
 0x20d   :  { %515 = vset.pattern.permute.xlu1 %v317_v52 }
 0x20e   :  { %511 = vset.pattern.permute.xlu2 %v293_v50 }
 0x215   :  { %368 = vperm.xlu1 %515, %v321_v51  }
 0x216   :  { %344 = vperm.xlu2 %511, %v321_v51  }
 0x21e   :  { %514 = vset.pattern.permute.xlu2 %v311_v54 }
 0x220   :  { %v278_v55 = vpop.permute.xlu2 %277 }
 0x221   :  { %v378_v62 = vmul.f32 %v814_v57, %v278_v55  ;;  %v379_v63 = vmul.f32 %v816_v1, %v278_v55 }
 0x226   :  { %362 = vperm.xlu2 %514, %v321_v51  }
 0x230   :  { %v296_v56 = vpop.permute.xlu2 %295 }
 0x231   :  { %v384_v52 = vmul.f32 %v376_v46, %v296_v56  ;;  %v385_v53 = vmul.f32 %v377_v47, %v296_v56 }
 0x237   :  { %v290_v60 = vpop.permute.xlu1 %289  ;;  %v284_v19 = vpop.permute.xlu0 %283 }
 0x238   :  { %v380_v29 = vmul.f32 %v372_v17, %v284_v19  ;;  %v381_v30 = vmul.f32 %v373_v18, %v284_v19  ;;  %v382_v40 = vmul.f32 %v374_v37, %v290_v60  ;;  %v383_v41 = vmul.f32 %v375_v38, %v290_v60 }
 0x240   :  { %v302_v61 = vpop.permute.xlu2 %301 }
 0x241   :  { %v402_v0 = vmul.f32 %v818_v58, %v302_v61  ;;  %v403_v5 = vmul.f32 %v820_v59, %v302_v61 }
 0x243   :  { %v418_v9 = vadd.f32 %v402_v0, %v378_v62  ;;  %v419_v10 = vadd.f32 %v403_v5, %v379_v63 }
 0x245   :  { %v434_v24 = vadd.f32 %v418_v9, %v756_v4  ;;  %v435_v25 = vadd.f32 %v419_v10, %v760_v6  ;;  %v398_v4 = vld [vmem:[#allocation10 + $0x20] sm:$0xff]  ;;  %v399_v6 = vld [vmem:[#allocation10 + $0x28] sm:$0xff] }
 0x247   :  { %450 = vst [vmem:[#allocation11] sm:$0xff] %v434_v24  ;;  %v308_v28 = vpop.permute.xlu1 %307  ;;  %v327_v50 = vpop.permute.xlu0 %326 }
 0x248   :  { %451 = vst [vmem:[#allocation11 + $0x8] sm:$0xff] %v435_v25  ;;  %v404_v31 = vmul.f32 %v396_v26, %v308_v28  ;;  %v405_v32 = vmul.f32 %v397_v27, %v308_v28 }
 0x24a   :  { %v420_v33 = vadd.f32 %v404_v31, %v380_v29  ;;  %v421_v34 = vadd.f32 %v405_v32, %v381_v30  ;;  %v387_v29 = vmul.f32 %v816_v1, %v327_v50 }
 0x24c   :  { %v436_v35 = vadd.f32 %v420_v33, %v774_v13  ;;  %v437_v36 = vadd.f32 %v421_v34, %v776_v14  ;;  %v400_v14 = vld [vmem:[#allocation10 + $0x30] sm:$0xff] }
 0x24e   :  { %452 = vst [vmem:[#allocation11 + $0x10] sm:$0xff] %v436_v35 }
 0x24f   :  { %453 = vst [vmem:[#allocation11 + $0x18] sm:$0xff] %v437_v36 }
 0x250   :  { %v314_v39 = vpop.permute.xlu2 %313 }
 0x251   :  { %v406_v42 = vmul.f32 %v398_v4, %v314_v39  ;;  %v407_v43 = vmul.f32 %v399_v6, %v314_v39 }
 0x253   :  { %v422_v44 = vadd.f32 %v406_v42, %v382_v40  ;;  %v423_v45 = vadd.f32 %v407_v43, %v383_v41 }
 0x255   :  { %v438_v48 = vadd.f32 %v422_v44, %v762_v7  ;;  %v439_v13 = vadd.f32 %v423_v45, %v764_v8 }
 0x257   :  { %v320_v51 = vpop.permute.xlu1 %319  ;;  %454 = vst [vmem:[#allocation11 + $0x20] sm:$0xff] %v438_v48  ;;  %v357_v0 = vpop.permute.xlu0 %356 }
 0x258   :  { %455 = vst [vmem:[#allocation11 + $0x28] sm:$0xff] %v439_v13  ;;  %v408_v54 = vmul.f32 %v400_v14, %v320_v51  ;;  %v409_v55 = vmul.f32 %v401_v49, %v320_v51  ;;  %v412_v8 = vmul.f32 %v396_v26, %v357_v0  ;;  %v413_v5 = vmul.f32 %v397_v27, %v357_v0 }
 0x25a   :  { %v424_v60 = vadd.f32 %v408_v54, %v384_v52  ;;  %v425_v61 = vadd.f32 %v409_v55, %v385_v53 }
 0x25c   :  { %v440_v62 = vadd.f32 %v424_v60, %v792_v22  ;;  %v441_v63 = vadd.f32 %v425_v61, %v794_v23  ;;  %v386_v23 = vmul.f32 %v814_v57, %v327_v50 }
 0x25e   :  { %456 = vst [vmem:[#allocation11 + $0x30] sm:$0xff] %v440_v62 }
 0x25f   :  { %457 = vst [vmem:[#allocation11 + $0x38] sm:$0xff] %v441_v63 }
 0x260   :  { %v333_v7 = vpop.permute.xlu2 %332 }
 0x261   :  { %v388_v9 = vmul.f32 %v372_v17, %v333_v7  ;;  %v389_v10 = vmul.f32 %v373_v18, %v333_v7 }
 0x263   :  { %v428_v19 = vadd.f32 %v412_v8, %v388_v9  ;;  %v429_v24 = vadd.f32 %v413_v5, %v389_v10 }
 0x265   :  { %v444_v56 = vadd.f32 %v428_v19, %v770_v11  ;;  %v445_v25 = vadd.f32 %v429_v24, %v772_v12 }
 0x267   :  { %460 = vst [vmem:[#allocation11 + $0x50] sm:$0xff] %v444_v56  ;;  %v339_v28 = vpop.permute.xlu1 %338 }
 0x268   :  { %461 = vst [vmem:[#allocation11 + $0x58] sm:$0xff] %v445_v25  ;;  %v390_v32 = vmul.f32 %v374_v37, %v339_v28  ;;  %v391_v33 = vmul.f32 %v375_v38, %v339_v28 }
 0x270   :  { %v345_v30 = vpop.permute.xlu2 %344 }
 0x271   :  { %v392_v39 = vmul.f32 %v376_v46, %v345_v30  ;;  %v393_v40 = vmul.f32 %v377_v47, %v345_v30 }
 0x277   :  { %v351_v22 = vpop.permute.xlu1 %350 }
 0x278   :  { %v410_v26 = vmul.f32 %v818_v58, %v351_v22  ;;  %v411_v17 = vmul.f32 %v820_v59, %v351_v22 }
 0x27a   :  { %v426_v18 = vadd.f32 %v410_v26, %v386_v23  ;;  %v427_v27 = vadd.f32 %v411_v17, %v387_v29 }
 0x27c   :  { %v442_v31 = vadd.f32 %v426_v18, %v752_v2  ;;  %v443_v11 = vadd.f32 %v427_v27, %v754_v3 }
 0x27e   :  { %458 = vst [vmem:[#allocation11 + $0x40] sm:$0xff] %v442_v31 }
 0x27f   :  { %459 = vst [vmem:[#allocation11 + $0x48] sm:$0xff] %v443_v11 }
 0x280   :  { %v363_v12 = vpop.permute.xlu2 %362 }
 0x281   :  { %v414_v34 = vmul.f32 %v398_v4, %v363_v12  ;;  %v415_v57 = vmul.f32 %v399_v6, %v363_v12 }
 0x283   :  { %v430_v35 = vadd.f32 %v414_v34, %v390_v32  ;;  %v431_v1 = vadd.f32 %v415_v57, %v391_v33 }
 0x285   :  { %v446_v36 = vadd.f32 %v430_v35, %v778_v15  ;;  %v447_v58 = vadd.f32 %v431_v1, %v780_v16 }
 0x287   :  { %462 = vst [vmem:[#allocation11 + $0x60] sm:$0xff] %v446_v36  ;;  %v369_v59 = vpop.permute.xlu1 %368 }
 0x288   :  { %463 = vst [vmem:[#allocation11 + $0x68] sm:$0xff] %v447_v58  ;;  %v416_v2 = vmul.f32 %v400_v14, %v369_v59  ;;  %v417_v3 = vmul.f32 %v401_v49, %v369_v59 }
 0x28a   :  { %v432_v41 = vadd.f32 %v416_v2, %v392_v39  ;;  %v433_v42 = vadd.f32 %v417_v3, %v393_v40 }
 0x28c   :  { %v448_v37 = vadd.f32 %v432_v41, %v788_v20  ;;  %v449_v15 = vadd.f32 %v433_v42, %v790_v21 }
 0x28e   :  { %464 = vst [vmem:[#allocation11 + $0x70] sm:$0xff] %v448_v37 }
 0x28f   :  { %465 = vst [vmem:[#allocation11 + $0x78] sm:$0xff] %v449_v15 }
 0x290   :  { %478 = dma.vmem_to_hbm [thread:$0]  %s471_s4, 2048, %s473_s8, [#allocation4], %s679_s1, %s679_s1, %s680_s16  }
 0x291   :  { %673 = dma.done.wait [#allocation4], 2048  }
 0x292   :  { %674 = vsyncadd [#allocation4], 4294965248 }
 0x293   :  { %483 = vsyncpa [#allocation3], 1 }
 0x294   :  { %484 = vsyncpa [#allocation6], 1 }
 0x295   :  { %485 = vsyncpa [#allocation9], 1 }
 0x296   :  { %486 = vsyncpa [#allocation4], 1 }

</bundles_post_ra>
